<compile_context>
chip_gen: v6e
topology: v6e:2x2x1
jax: 0.10.0
libtpu: 0.0.40
codegen_flags: <defaults>
</compile_context>

<pallas_src>
from functools import partial

import jax
import jax.numpy as jnp
from jax.experimental import pallas as pl
from jax.experimental.pallas import tpu as pltpu


LANE = 128
SUBLANE = 8


def _round_up(x, m):
    return ((x + m - 1) // m) * m


def policy_value_kernel(x_ref, w1_ref, b1_ref, wh_ref, bh_ref, out_ref, *, n_actions):
    # base_layer: Linear + ReLU  (hidden is lane-dense: padded to 128, zeros in pad)
    x = x_ref[...]
    h = jnp.dot(x, w1_ref[...], preferred_element_type=jnp.float32) + b1_ref[...]
    h = jnp.maximum(h, 0.0)

    # fused policy + value head: one MXU matmul, (TB, 128) lane-dense result.
    head = jnp.dot(h, wh_ref[...], preferred_element_type=jnp.float32) + bh_ref[...]

    # softmax over the real action columns only (mask out value col + padding).
    lane = jax.lax.broadcasted_iota(jnp.int32, head.shape, 1)
    action_mask = lane < n_actions
    m = jnp.max(jnp.where(action_mask, head, -jnp.inf), axis=-1, keepdims=True)
    e = jnp.where(action_mask, jnp.exp(head - m), 0.0)
    denom = jnp.sum(e, axis=-1, keepdims=True)
    probs = e / denom  # exact divide: keeps sum-to-1 within 1e-5

    # single lane-dense output slab: probs in [0, n_actions), value at col n_actions.
    value_part = jnp.where(lane == n_actions, head, 0.0)
    out_ref[...] = (probs + value_part).astype(out_ref.dtype)


def pack_params(params):
    """Host-side, one-time packing: fuse heads and pad hidden/head dims to 128 lanes."""
    w1, b1 = params["w1"], params["b1"]
    wp, bp = params["wp"], params["bp"]
    wv, bv = params["wv"], params["bv"]
    n_state, n_hidden = w1.shape
    n_actions = wp.shape[1]

    hid_pad = _round_up(max(n_hidden, LANE), LANE)
    head_pad = _round_up(max(n_actions + 1, LANE), LANE)

    w1p = jnp.zeros((n_state, hid_pad), jnp.float32).at[:, :n_hidden].set(w1)
    b1p = jnp.zeros((1, hid_pad), jnp.float32).at[:, :n_hidden].set(b1)

    wh = jnp.concatenate([wp, wv], axis=1)           # (n_hidden, n_actions + 1)
    bh = jnp.concatenate([bp, bv], axis=1)           # (1, n_actions + 1)
    whp = jnp.zeros((hid_pad, head_pad), jnp.float32).at[:n_hidden, : n_actions + 1].set(wh)
    bhp = jnp.zeros((1, head_pad), jnp.float32).at[:, : n_actions + 1].set(bh)

    packed = dict(w1p=w1p, b1p=b1p, whp=whp, bhp=bhp)
    return packed, n_actions


def policy_value_forward(x, packed, n_actions, *, batch_tile=512):
    """x: (B, n_state) f32. Returns (action_probs (B, n_actions), value (B, 1))."""
    w1p, b1p, whp, bhp = packed["w1p"], packed["b1p"], packed["whp"], packed["bhp"]
    B, n_state = x.shape
    head_pad = whp.shape[1]

    # Batch tile: multiple of 8 sublanes, capped for VMEM portability (v7x 64 MiB).
    tb = min(batch_tile, _round_up(B, SUBLANE))
    b_pad = _round_up(B, tb)
    if b_pad != B:
        x = jnp.pad(x, ((0, b_pad - B), (0, 0)))
    grid = (b_pad // tb,)

    out = pl.pallas_call(
        partial(policy_value_kernel, n_actions=n_actions),
        out_shape=jax.ShapeDtypeStruct((b_pad, head_pad), jnp.float32),
        grid_spec=pltpu.PrefetchScalarGridSpec(
            num_scalar_prefetch=0,
            grid=grid,
            in_specs=[
                pl.BlockSpec((tb, n_state), lambda i: (i, 0)),     # x tile (pipelined)
                pl.BlockSpec(w1p.shape, lambda i: (0, 0)),         # weights: resident
                pl.BlockSpec(b1p.shape, lambda i: (0, 0)),
                pl.BlockSpec(whp.shape, lambda i: (0, 0)),
                pl.BlockSpec(bhp.shape, lambda i: (0, 0)),
            ],
            out_specs=pl.BlockSpec((tb, head_pad), lambda i: (i, 0)),
        ),
        compiler_params=pltpu.CompilerParams(
            dimension_semantics=("parallel",),      # 2x on v7x dual TensorCores
            vmem_limit_bytes=64 * 1024 * 1024,
        ),
    )(x, w1p, b1p, whp, bhp)

    probs = out[:B, :n_actions]
    value = out[:B, n_actions : n_actions + 1]
    return probs, value


def init_params(key, n_state, n_hidden, n_actions):
    """Deterministic init mimicking nn.Linear default U(-1/sqrt(fan_in), 1/sqrt(fan_in))."""
    ks = jax.random.split(key, 6)

    def lin(kw, kb, fan_in, fan_out):
        bound = 1.0 / jnp.sqrt(jnp.asarray(fan_in, jnp.float32))
        w = jax.random.uniform(kw, (fan_in, fan_out), jnp.float32, -bound, bound)
        b = jax.random.uniform(kb, (1, fan_out), jnp.float32, -bound, bound)
        return w, b

    w1, b1 = lin(ks[0], ks[1], n_state, n_hidden)
    wp, bp = lin(ks[2], ks[3], n_hidden, n_actions)
    wv, bv = lin(ks[4], ks[5], n_hidden, 1)
    return dict(w1=w1, b1=b1, wp=wp, bp=bp, wv=wv, bv=bv)


def reference_forward(x, p):
    h = jnp.maximum(x @ p["w1"] + p["b1"], 0.0)
    logits = h @ p["wp"] + p["bp"]
    probs = jax.nn.softmax(logits, axis=-1)
    value = h @ p["wv"] + p["bv"]
    return probs, value


if __name__ == "__main__":
    key = jax.random.PRNGKey(0)
    n_state, n_hidden, n_actions, batch = 2, 32, 3, 8

    k_params, k_x, k_x2 = jax.random.split(key, 3)
    params = init_params(k_params, n_state, n_hidden, n_actions)
    packed, n_act = pack_params(params)

    # main check (B = 8)
    x = jax.random.normal(k_x, (batch, n_state), jnp.float32)
    probs, value = jax.block_until_ready(policy_value_forward(x, packed, n_act))
    ref_probs, ref_value = reference_forward(x, params)

    assert probs.shape == (batch, n_actions)
    assert value.shape == (batch, 1)
    assert jnp.allclose(jnp.sum(probs, axis=-1), 1.0, atol=1e-5)
    assert jnp.allclose(probs, ref_probs, atol=1e-5)
    assert jnp.allclose(value, ref_value, atol=1e-5)

    # secondary check: non-multiple-of-8 batch exercises the padding path
    x2 = jax.random.normal(k_x2, (13, n_state), jnp.float32)
    probs2, value2 = jax.block_until_ready(policy_value_forward(x2, packed, n_act))
    ref_probs2, ref_value2 = reference_forward(x2, params)
    assert probs2.shape == (13, n_actions) and value2.shape == (13, 1)
    assert jnp.allclose(probs2, ref_probs2, atol=1e-5)
    assert jnp.allclose(value2, ref_value2, atol=1e-5)

    print("KERNEL_OK")
</pallas_src>

<mosaic_0001>
module attributes {stable_mosaic.version = 11 : i64} {
  func.func @policy_value_kernel(%arg0: i32, %arg1: memref<8x2xf32, #tpu.memory_space<vmem>>, %arg2: memref<2x128xf32, #tpu.memory_space<vmem>>, %arg3: memref<1x128xf32, #tpu.memory_space<vmem>>, %arg4: memref<128x128xf32, #tpu.memory_space<vmem>>, %arg5: memref<1x128xf32, #tpu.memory_space<vmem>>, %arg6: memref<8x128xf32, #tpu.memory_space<vmem>>) attributes {dimension_semantics = [#tpu.dimension_semantics<parallel>], iteration_bounds = array<i64: 1>, scalar_prefetch = 0 : i64, scratch_operands = 0 : i64, tpu.core_type = #tpu.core_type<tc>, window_params = [{transform_indices = @transform_0, window_bounds = array<i64: 8, 2>}, {pipeline_mode = #tpu.pipeline_mode<synchronous>, transform_indices = @transform_1, window_bounds = array<i64: 2, 128>}, {pipeline_mode = #tpu.pipeline_mode<synchronous>, transform_indices = @transform_2, window_bounds = array<i64: 1, 128>}, {pipeline_mode = #tpu.pipeline_mode<synchronous>, transform_indices = @transform_3, window_bounds = array<i64: 128, 128>}, {pipeline_mode = #tpu.pipeline_mode<synchronous>, transform_indices = @transform_4, window_bounds = array<i64: 1, 128>}, {transform_indices = @transform_5, window_bounds = array<i64: 8, 128>}]} {
    %c0 = arith.constant 0 : index
    %c0_0 = arith.constant 0 : index
    %0 = vector.load %arg1[%c0, %c0_0] : memref<8x2xf32, #tpu.memory_space<vmem>>, vector<8x2xf32>
    %c0_1 = arith.constant 0 : index
    %c0_2 = arith.constant 0 : index
    %1 = vector.load %arg2[%c0_1, %c0_2] : memref<2x128xf32, #tpu.memory_space<vmem>>, vector<2x128xf32>
    %cst = arith.constant dense<0.000000e+00> : vector<8x128xf32>
    %2 = tpu.matmul %0, %1, %cst {dimension_numbers = #tpu.dot_dimension_numbers<[1], [0], [0], [1], [0, 0, 1, 1], [], []>} : vector<8x2xf32>, vector<2x128xf32>, vector<8x128xf32> -> vector<8x128xf32>
    %c0_3 = arith.constant 0 : index
    %c0_4 = arith.constant 0 : index
    %3 = vector.load %arg3[%c0_3, %c0_4] : memref<1x128xf32, #tpu.memory_space<vmem>>, vector<1x128xf32>
    %4 = vector.broadcast %3 : vector<1x128xf32> to vector<8x128xf32>
    %5 = arith.addf %2, %4 : vector<8x128xf32>
    %cst_5 = arith.constant 0.000000e+00 : f32
    %6 = vector.broadcast %cst_5 : f32 to vector<8x128xf32>
    %7 = arith.maximumf %5, %6 : vector<8x128xf32>
    %c0_6 = arith.constant 0 : index
    %c0_7 = arith.constant 0 : index
    %8 = vector.load %arg4[%c0_6, %c0_7] : memref<128x128xf32, #tpu.memory_space<vmem>>, vector<128x128xf32>
    %cst_8 = arith.constant dense<0.000000e+00> : vector<8x128xf32>
    %9 = tpu.matmul %7, %8, %cst_8 {dimension_numbers = #tpu.dot_dimension_numbers<[1], [0], [0], [1], [0, 0, 1, 1], [], []>} : vector<8x128xf32>, vector<128x128xf32>, vector<8x128xf32> -> vector<8x128xf32>
    %c0_9 = arith.constant 0 : index
    %c0_10 = arith.constant 0 : index
    %10 = vector.load %arg5[%c0_9, %c0_10] : memref<1x128xf32, #tpu.memory_space<vmem>>, vector<1x128xf32>
    %11 = vector.broadcast %10 : vector<1x128xf32> to vector<8x128xf32>
    %12 = arith.addf %9, %11 : vector<8x128xf32>
    %13 = tpu.iota {dimensions = array<i32: 1>} : vector<8x128xi32>
    %c3_i32 = arith.constant 3 : i32
    %14 = vector.broadcast %c3_i32 : i32 to vector<8x128xi32>
    %15 = arith.cmpi slt, %13, %14 : vector<8x128xi32>
    %cst_11 = arith.constant 0xFF800000 : f32
    %16 = vector.broadcast %cst_11 : f32 to vector<8x128xf32>
    %17 = arith.select %15, %12, %16 : vector<8x128xi1>, vector<8x128xf32>
    %cst_12 = arith.constant dense<0xFF800000> : vector<8xf32>
    %18 = vector.multi_reduction <maximumf>, %17, %cst_12 [1] : vector<8x128xf32> to vector<8xf32>
    %19 = vector.shape_cast %18 : vector<8xf32> to vector<8x1xf32>
    %20 = vector.broadcast %19 : vector<8x1xf32> to vector<8x128xf32>
    %21 = arith.subf %12, %20 : vector<8x128xf32>
    %22 = math.exp %21 : vector<8x128xf32>
    %cst_13 = arith.constant 0.000000e+00 : f32
    %23 = vector.broadcast %cst_13 : f32 to vector<8x128xf32>
    %24 = arith.select %15, %22, %23 : vector<8x128xi1>, vector<8x128xf32>
    %cst_14 = arith.constant dense<0.000000e+00> : vector<8xf32>
    %25 = vector.multi_reduction <add>, %24, %cst_14 [1] : vector<8x128xf32> to vector<8xf32>
    %26 = vector.shape_cast %25 : vector<8xf32> to vector<8x1xf32>
    %27 = vector.broadcast %26 : vector<8x1xf32> to vector<8x128xf32>
    %28 = arith.divf %24, %27 : vector<8x128xf32>
    %c3_i32_15 = arith.constant 3 : i32
    %29 = vector.broadcast %c3_i32_15 : i32 to vector<8x128xi32>
    %30 = arith.cmpi eq, %13, %29 : vector<8x128xi32>
    %cst_16 = arith.constant 0.000000e+00 : f32
    %31 = vector.broadcast %cst_16 : f32 to vector<8x128xf32>
    %32 = arith.select %30, %12, %31 : vector<8x128xi1>, vector<8x128xf32>
    %33 = arith.addf %28, %32 : vector<8x128xf32>
    %c0_17 = arith.constant 0 : index
    %c0_18 = arith.constant 0 : index
    %34 = vector.load %arg6[%c0_17, %c0_18] : memref<8x128xf32, #tpu.memory_space<vmem>>, vector<8x128xf32>
    tpu.vector_store %arg6[%c0_17, %c0_18], %33 {strides = array<i32>} : memref<8x128xf32, #tpu.memory_space<vmem>>, vector<8x128xf32>,
    return
  }
  func.func @transform_0(%arg0: i32) -> (i32, i32) {
    %c0_i32 = arith.constant 0 : i32
    %c0_i32_0 = arith.constant 0 : i32
    return %arg0, %c0_i32 : i32, i32
  }
  func.func @transform_1(%arg0: i32) -> (i32, i32) {
    %c0_i32 = arith.constant 0 : i32
    %c0_i32_0 = arith.constant 0 : i32
    %c0_i32_1 = arith.constant 0 : i32
    return %c0_i32, %c0_i32_0 : i32, i32
  }
  func.func @transform_2(%arg0: i32) -> (i32, i32) {
    %c0_i32 = arith.constant 0 : i32
    %c0_i32_0 = arith.constant 0 : i32
    %c0_i32_1 = arith.constant 0 : i32
    return %c0_i32, %c0_i32_0 : i32, i32
  }
  func.func @transform_3(%arg0: i32) -> (i32, i32) {
    %c0_i32 = arith.constant 0 : i32
    %c0_i32_0 = arith.constant 0 : i32
    %c0_i32_1 = arith.constant 0 : i32
    return %c0_i32, %c0_i32_0 : i32, i32
  }
  func.func @transform_4(%arg0: i32) -> (i32, i32) {
    %c0_i32 = arith.constant 0 : i32
    %c0_i32_0 = arith.constant 0 : i32
    %c0_i32_1 = arith.constant 0 : i32
    return %c0_i32, %c0_i32_0 : i32, i32
  }
  func.func @transform_5(%arg0: i32) -> (i32, i32) {
    %c0_i32 = arith.constant 0 : i32
    %c0_i32_0 = arith.constant 0 : i32
    return %arg0, %c0_i32 : i32, i32
  }
}

</mosaic_0001>

<bundles_post_ra>
// kernel: tpu_custom_call.1
= control target key start
LH: loop header
LB: loop body
LE: loop exit
PB: predicated region body
PF: predicated region fallthrough
CT: control target
= control target key end

     0   :  { %10 = vsyncpa [#allocation3], 0  ;;  %s420_s0 = inlined_call_operand.vmem [shape: f32[8,2], index: 0, kind: input, shape index: {}]   ;;  %s421_s1 = inlined_call_operand.vmem [shape: f32[2,128], index: 1, kind: input, shape index: {}]   ;;  %s422_s2 = inlined_call_operand.vmem [shape: f32[1,128], index: 2, kind: input, shape index: {}]   ;;  %s423_s3 = inlined_call_operand.hbm [shape: f32[128,128], index: 3, kind: input, shape index: {}]   ;;  %s424_s4 = inlined_call_operand.vmem [shape: f32[1,128], index: 4, kind: input, shape index: {}]   ;;  %s425_s5 = inlined_call_operand.hbm [shape: f32[8,128], index: 5, kind: output, shape index: {}]  }
   0x1   :  { %11 = vsyncpa [#allocation4], 0  ;;  %s366_s18 = smov [#allocation2]  }
   0x2   :  { %s23_s19 = sshll.u32 %s366_s18, 4  ;;  %s24_s19 = int_to_ptr.vmem [resolvable:$true] %s23_s19 }
   0x3   :  { %s330_s20 = scalar_lea.vmem %s24_s19, 2048  ;;  %p335_p1 = scmp.lt.s32.totalorder %s24_s19, %s24_s19 }
   0x4   :  { %p331_p0 = scmp.ne.s32.totalorder %s24_s19, %s330_s20  ;;  %p336_p2 = scmp.lt.s32.totalorder %s330_s20, %s330_s20 }
   0x6   :  { %p337_p3 = por %p336_p2, %p335_p1 }
   0x8   :  { %p338_p4 = pnand %p337_p3, %p331_p0 }
   0xa   :  { %341 = shalt.err (!%p338_p4)
}
   0xb   :  { %s367_s21 = smov 128   ;;  %s368_s22 = smov 8  }
   0xc   :  { %29 = dma.hbm_to_vmem [thread:$0]  %s423_s3, 2048, %s24_s19, [#allocation3], %s367_s21, %s367_s21, %s368_s22  }
   0xd   :  { %362 = dma.done.wait [#allocation3], 2048  }
   0xe   :  { %363 = vsyncadd [#allocation3], 4294965248  ;;  %v369_v0 = vmov 0.0   ;;  %vm370_vm0 = vmmov 0   ;;  %vm48_vm1 = vcmask 1041408   ;;  %vm44_vm2 = vcmask 15360  }
   0xf   :  { %272 = vmatprep.subr.mxu0 %v369_v0  ;;  %274 = vmatprep.mubr.msk.f32.mxu0 %vm370_vm0, %v369_v0  ;;  %v36_v1 = vld [vmem:[%s421_s1] sm:$0x3]  ;;  %v138_v3 = vld [vmem:[#allocation2 + $0x78] sm:$0xff]  ;;  %v137_v4 = vld [vmem:[#allocation2 + $0x70] sm:$0xff]  ;;  %v216_v24 = vlaneseq }
  0x10   :  { %277 = vmatprep.subr.mxu1 %v369_v0  ;;  %309 = vmatprep.mubr.msk.f32.mxu1 %vm370_vm0, %v369_v0  ;;  %v35_v2 = vld [vmem:[%s420_s0] sm:$0xff]  ;;  %v136_v5 = vld [vmem:[#allocation2 + $0x68] sm:$0xff]  ;;  %v134_v7 = vld [vmem:[#allocation2 + $0x58] sm:$0xff] }
  0x11   :  { %273 = vmatpush3.msk.msra.mxu0 %vm48_vm1, %v36_v1  ;;  %278 = vmatpush3.msra.mxu1 %v138_v3  ;;  %v135_v6 = vld [vmem:[#allocation2 + $0x60] sm:$0xff]  ;;  %v133_v8 = vld [vmem:[#allocation2 + $0x50] sm:$0xff]  ;;  %v132_v9 = vld [vmem:[#allocation2 + $0x48] sm:$0xff]  ;;  %v217_v25 = vand.u32 127, %v216_v24 }
  0x12   :  { %275 = vmatmul.mubr.msk.f32.vlgmr.msra.gmra.mxu0 %vm44_vm2, %v35_v2  ;;  %279 = vmatprep.subr.mxu1 %v369_v0  ;;  %v131_v10 = vld [vmem:[#allocation2 + $0x40] sm:$0xff]  ;;  %v130_v11 = vld [vmem:[#allocation2 + $0x38] sm:$0xff]  ;;  %v129_v12 = vld [vmem:[#allocation2 + $0x30] sm:$0xff] }
  0x13   :  { %280 = vmatpush3.msra.mxu1 %v137_v4  ;;  %v128_v13 = vld [vmem:[#allocation2 + $0x28] sm:$0xff]  ;;  %v127_v14 = vld [vmem:[#allocation2 + $0x20] sm:$0xff]  ;;  %v126_v15 = vld [vmem:[#allocation2 + $0x18] sm:$0xff]  ;;  %vm218_vm3 = vcmp.lt.s32.totalorder %v217_v25, 3  ;;  %vm230_vm4 = vcmp.eq.s32.totalorder %v217_v25, 3 }
  0x14   :  { %281 = vmatprep.subr.mxu1 %v369_v0  ;;  %v125_v16 = vld [vmem:[#allocation2 + $0x10] sm:$0xff]  ;;  %v124_v17 = vld [vmem:[#allocation2 + $0x8] sm:$0xff]  ;;  %v123_v18 = vld [vmem:[#allocation2] sm:$0xff] }
  0x15   :  { %282 = vmatpush3.msra.mxu1 %v136_v5  ;;  %v249_v19 = vld [vmem:[%s422_s2] ss:$0 sm:$0xff]  ;;  %s371_s2 = smov [#allocation5]  }
  0x16   :  { %283 = vmatprep.subr.mxu1 %v369_v0  ;;  %v252_v26 = vld [vmem:[%s424_s4] ss:$0 sm:$0xff]  ;;  %s240_s30 = sshll.u32 %s371_s2, 4  ;;  %s241_s30 = int_to_ptr.vmem [resolvable:$true] %s240_s30 }
  0x17   :  { %284 = vmatpush3.msra.mxu1 %v135_v6  ;;  %s342_s4 = scalar_lea.vmem %s241_s30, 128  ;;  %p347_p6 = scmp.lt.s32.totalorder %s241_s30, %s241_s30 }
  0x18   :  { %285 = vmatprep.subr.mxu1 %v369_v0  ;;  %p343_p5 = scmp.ne.s32.totalorder %s241_s30, %s342_s4  ;;  %p348_p7 = scmp.lt.s32.totalorder %s342_s4, %s342_s4 }
  0x19   :  { %286 = vmatpush3.msra.mxu1 %v134_v7 }
  0x1a   :  { %287 = vmatprep.subr.mxu1 %v369_v0  ;;  %p349_p8 = por %p348_p7, %p347_p6 }
  0x1b   :  { %288 = vmatpush3.msra.mxu1 %v133_v8 }
  0x1c   :  { %289 = vmatprep.subr.mxu1 %v369_v0  ;;  %p350_p9 = pnand %p349_p8, %p343_p5 }
  0x1d   :  { %290 = vmatpush3.msra.mxu1 %v132_v9 }
  0x1e   :  { %291 = vmatprep.subr.mxu1 %v369_v0 }
  0x1f   :  { %292 = vmatpush3.msra.mxu1 %v131_v10 }
  0x20   :  { %293 = vmatprep.subr.mxu1 %v369_v0 }
  0x21   :  { %294 = vmatpush3.msra.mxu1 %v130_v11 }
  0x22   :  { %295 = vmatprep.subr.mxu1 %v369_v0 }
  0x23   :  { %296 = vmatpush3.msra.mxu1 %v129_v12 }
  0x24   :  { %297 = vmatprep.subr.mxu1 %v369_v0 }
  0x25   :  { %298 = vmatpush3.msra.mxu1 %v128_v13 }
  0x26   :  { %299 = vmatprep.subr.mxu1 %v369_v0 }
  0x27   :  { %300 = vmatpush3.msra.mxu1 %v127_v14 }
  0x28   :  { %301 = vmatprep.subr.mxu1 %v369_v0 }
  0x29   :  { %302 = vmatpush3.msra.mxu1 %v126_v15 }
  0x2a   :  { %303 = vmatprep.subr.mxu1 %v369_v0 }
  0x2b   :  { %304 = vmatpush3.msra.mxu1 %v125_v16 }
  0x2c   :  { %305 = vmatprep.subr.mxu1 %v369_v0 }
  0x2d   :  { %306 = vmatpush3.msra.mxu1 %v124_v17 }
  0x2e   :  { %307 = vmatprep.subr.mxu1 %v369_v0 }
  0x2f   :  { %308 = vmatpush3.msra.mxu1 %v123_v18 }
  0xd2   :  { %v118_v20 = vpop.f32.mrf.mxu0 }
  0xd3   :  { %v119_v21 = vadd.f32 %v249_v19, %v118_v20 }
  0xd4   :  { %v276_v22 = vpop.f32.mrf.mxu0 }
  0xd5   :  { %v122_v23 = vmax.f32 %v119_v21, 0.0 }
  0xd7   :  { %310 = vmatmul.mubr.f32.vlgmr.msra.gmra.mxu1 %v122_v23 }
 0x197   :  { %v212_v27 = vpop.f32.mrf.mxu1 }
 0x198   :  { %v213_v28 = vadd.f32 %v252_v26, %v212_v27 }
 0x199   :  { %v311_v29 = vpop.f32.mrf.mxu1 }
 0x19a   :  { %v219_v30 = vsel %vm218_vm3, %v213_v28, -inf  ;;  %v231_v39 = vsel %vm230_vm4, %v213_v28, 0.0 }
 0x19b   :  { %220 = vmax.xlane.f32.xlu0 %v219_v30 }
 0x224   :  { %v221_v31 = vpop.xlane.xlu0 %220 }
 0x225   :  { %v222_v32 = vsub.f32 %v213_v28, %v221_v31 }
 0x227   :  { %v223_v33 = vmul.f32 1.442695, %v222_v32 }
 0x229   :  { %318 = vpow2.f32 %v223_v33 }
 0x236   :  { %v319_v34 = vpop.eup %318 }
 0x237   :  { %v225_v35 = vsel %vm218_vm3, %v319_v34, 0.0 }
 0x238   :  { %226 = vadd.xlane.f32.xlu0 %v225_v35 }
 0x2c1   :  { %v227_v36 = vpop.xlane.xlu0 %226 }
 0x2c2   :  { %320 = vrcp.f32 %v227_v36 }
 0x2cf   :  { %v321_v37 = vpop.eup %320 }
 0x2d0   :  { %v229_v38 = vmul.f32 %v321_v37, %v225_v35 }
 0x2d2   :  { %v232_v40 = vadd.f32 %v231_v39, %v229_v38 }
 0x2d4   :  { %233 = vst [vmem:[#allocation5] sm:$0xff] %v232_v40 }
 0x2d5   :  { %353 = shalt.err (!%p350_p9)
}
 0x2d6   :  { %243 = dma.vmem_to_hbm [thread:$0]  %s241_s30, 128, %s425_s5, [#allocation4]  }
 0x2d7   :  { %364 = dma.done.wait [#allocation4], 128  }
 0x2d8   :  { %365 = vsyncadd [#allocation4], 4294967168 }
 0x2d9   :  { %247 = vsyncpa [#allocation3], 1 }
 0x2da   :  { %248 = vsyncpa [#allocation4], 1 }

</bundles_post_ra>
